<compile_context>
chip_gen: v7x
topology: tpu7x:2x2x1
jax: 0.10.0
libtpu: 0.0.40
codegen_flags: <defaults>
</compile_context>

<pallas_src>
import jax
import jax.numpy as jnp
from jax.experimental import pallas as pl
from jax.experimental.pallas import tpu as pltpu


def mlp_kernel(x_ref, w1_ref, b1_ref, w2_ref, o_ref):
    x = x_ref[...]          # (TB, 2)
    w1 = w1_ref[...]        # (2, Hp)   Hp = hidden padded to a multiple of 128
    b1 = b1_ref[...]        # (1, Hp)
    w2 = w2_ref[...]        # (1, Hp)   second-layer weight stored as a row

    # Layer 1: K=2 contraction -> two VPU broadcast multiply-adds (no MXU).
    h = x[:, 0:1] * w1[0:1, :] + x[:, 1:2] * w1[1:2, :] + b1     # (TB, Hp)
    h = jnp.maximum(h, 0.0)                                      # ReLU (VPU)

    # Layer 2: N=1 output -> VPU elementwise mul + XLU lane reduction (no MXU).
    o_ref[...] = jnp.sum(h * w2, axis=-1, keepdims=True)         # (TB, 1)


def attacked_model_forward(x, w1, b1, w2, *, tb=1024):
    """x: (B, 2) f32; w1: (2, H); b1: (1, H); w2: (H, 1). Returns (B, 1) f32."""
    B, d_in = x.shape
    H = w1.shape[1]
    d_out = w2.shape[1]
    assert d_in == 2 and d_out == 1 and b1.shape == (1, H) and w2.shape == (H, 1)

    # Pad hidden dim to a lane multiple (128). Bit-identical: padded hidden units
    # see bias 0, ReLU(0) = 0, and zero rows of w2.
    Hp = ((H + 127) // 128) * 128
    w1p = jnp.pad(w1, ((0, 0), (0, Hp - H)))
    b1p = jnp.pad(b1, ((0, 0), (0, Hp - H)))
    w2p = jnp.pad(w2, ((0, Hp - H), (0, 0))).T            # (1, Hp) row layout

    if B <= tb:
        # Small batch: everything VMEM-resident, no grid / pipelining machinery.
        Bp = ((B + 7) // 8) * 8                           # sublane multiple
        xp = jnp.pad(x, ((0, Bp - B), (0, 0)))
        out = pl.pallas_call(
            mlp_kernel,
            out_shape=jax.ShapeDtypeStruct((Bp, 1), jnp.float32),
            in_specs=[pl.BlockSpec(memory_space=pltpu.MemorySpace.VMEM)] * 4,
            out_specs=pl.BlockSpec(memory_space=pltpu.MemorySpace.VMEM),
        )(xp, w1p, b1p, w2p)
    else:
        # Large batch: tile the batch axis; weights stay resident across iterations.
        Bp = ((B + tb - 1) // tb) * tb
        xp = jnp.pad(x, ((0, Bp - B), (0, 0)))
        out = pl.pallas_call(
            mlp_kernel,
            out_shape=jax.ShapeDtypeStruct((Bp, 1), jnp.float32),
            grid_spec=pltpu.PrefetchScalarGridSpec(
                num_scalar_prefetch=0,
                grid=(Bp // tb,),
                in_specs=[
                    pl.BlockSpec((tb, d_in), lambda i: (i, 0)),
                    pl.BlockSpec((d_in, Hp), lambda i: (0, 0)),
                    pl.BlockSpec((1, Hp), lambda i: (0, 0)),
                    pl.BlockSpec((1, Hp), lambda i: (0, 0)),
                ],
                out_specs=pl.BlockSpec((tb, 1), lambda i: (i, 0)),
            ),
            compiler_params=pltpu.CompilerParams(
                dimension_semantics=("parallel",)),   # shards batch across TCs on v7x
        )(xp, w1p, b1p, w2p)

    return out[:B]


def init_params(key, input_dim=2, hidden_layer_dim=500, output_dim=1):
    """Deterministic synthetic init mimicking nn.Linear's uniform(-1/sqrt(fan_in), +)."""
    k1, k2, k3 = jax.random.split(key, 3)
    bound1 = 1.0 / jnp.sqrt(jnp.float32(input_dim))
    bound2 = 1.0 / jnp.sqrt(jnp.float32(hidden_layer_dim))
    # Stored transposed relative to PyTorch: (in_features, out_features)
    w1 = jax.random.uniform(k1, (input_dim, hidden_layer_dim), jnp.float32,
                            minval=-bound1, maxval=bound1)
    b1 = jax.random.uniform(k2, (1, hidden_layer_dim), jnp.float32,
                            minval=-bound1, maxval=bound1)
    w2 = jax.random.uniform(k3, (hidden_layer_dim, output_dim), jnp.float32,
                            minval=-bound2, maxval=bound2)
    return w1, b1, w2


if __name__ == "__main__":
    key = jax.random.PRNGKey(0)
    kx, kp, kb = jax.random.split(key, 3)

    B, D_IN, H, D_OUT = 8, 2, 500, 1
    w1, b1, w2 = init_params(kp, D_IN, H, D_OUT)

    def ref_fwd(xx):
        return jnp.maximum(xx @ w1 + b1, 0.0) @ w2

    # Small-batch path (no grid, whole-array VMEM residency).
    x = jax.random.normal(kx, (B, D_IN), jnp.float32)
    out = jax.block_until_ready(attacked_model_forward(x, w1, b1, w2))
    assert out.shape == (B, D_OUT)
    assert jnp.allclose(out, ref_fwd(x), atol=1e-4, rtol=1e-5)

    # Large-batch path (parallel batch grid axis, weights VMEM-resident).
    xb = jax.random.normal(kb, (1024, D_IN), jnp.float32)
    outb = jax.block_until_ready(attacked_model_forward(xb, w1, b1, w2, tb=256))
    assert outb.shape == (1024, D_OUT)
    assert jnp.allclose(outb, ref_fwd(xb), atol=1e-4, rtol=1e-5)

    print("KERNEL_OK")
</pallas_src>

<mosaic_0001>
module attributes {stable_mosaic.version = 11 : i64} {
  func.func @mlp_kernel(%arg0: memref<8x2xf32, #tpu.memory_space<vmem>>, %arg1: memref<2x512xf32, #tpu.memory_space<vmem>>, %arg2: memref<1x512xf32, #tpu.memory_space<vmem>>, %arg3: memref<1x512xf32, #tpu.memory_space<vmem>>, %arg4: memref<8x1xf32, #tpu.memory_space<vmem>>) attributes {dimension_semantics = [], scalar_prefetch = 0 : i64, scratch_operands = 0 : i64, tpu.core_type = #tpu.core_type<tc>} {
    %c0 = arith.constant 0 : index
    %c0_0 = arith.constant 0 : index
    %0 = vector.load %arg0[%c0, %c0_0] : memref<8x2xf32, #tpu.memory_space<vmem>>, vector<8x2xf32>
    %c0_1 = arith.constant 0 : index
    %c0_2 = arith.constant 0 : index
    %1 = vector.load %arg1[%c0_1, %c0_2] : memref<2x512xf32, #tpu.memory_space<vmem>>, vector<2x512xf32>
    %c0_3 = arith.constant 0 : index
    %c0_4 = arith.constant 0 : index
    %2 = vector.load %arg2[%c0_3, %c0_4] : memref<1x512xf32, #tpu.memory_space<vmem>>, vector<1x512xf32>
    %c0_5 = arith.constant 0 : index
    %c0_6 = arith.constant 0 : index
    %3 = vector.load %arg3[%c0_5, %c0_6] : memref<1x512xf32, #tpu.memory_space<vmem>>, vector<1x512xf32>
    %4 = vector.extract_strided_slice %0 {offsets = [0, 0], sizes = [8, 1], strides = [1, 1]} : vector<8x2xf32> to vector<8x1xf32>
    %5 = vector.extract_strided_slice %1 {offsets = [0, 0], sizes = [1, 512], strides = [1, 1]} : vector<2x512xf32> to vector<1x512xf32>
    %6 = vector.broadcast %4 : vector<8x1xf32> to vector<8x512xf32>
    %7 = vector.broadcast %5 : vector<1x512xf32> to vector<8x512xf32>
    %8 = arith.mulf %6, %7 : vector<8x512xf32>
    %9 = vector.extract_strided_slice %0 {offsets = [0, 1], sizes = [8, 1], strides = [1, 1]} : vector<8x2xf32> to vector<8x1xf32>
    %10 = vector.extract_strided_slice %1 {offsets = [1, 0], sizes = [1, 512], strides = [1, 1]} : vector<2x512xf32> to vector<1x512xf32>
    %11 = vector.broadcast %9 : vector<8x1xf32> to vector<8x512xf32>
    %12 = vector.broadcast %10 : vector<1x512xf32> to vector<8x512xf32>
    %13 = arith.mulf %11, %12 : vector<8x512xf32>
    %14 = arith.addf %8, %13 : vector<8x512xf32>
    %15 = vector.broadcast %2 : vector<1x512xf32> to vector<8x512xf32>
    %16 = arith.addf %14, %15 : vector<8x512xf32>
    %cst = arith.constant 0.000000e+00 : f32
    %17 = vector.broadcast %cst : f32 to vector<8x512xf32>
    %18 = arith.maximumf %16, %17 : vector<8x512xf32>
    %19 = vector.broadcast %3 : vector<1x512xf32> to vector<8x512xf32>
    %20 = arith.mulf %18, %19 : vector<8x512xf32>
    %cst_7 = arith.constant dense<0.000000e+00> : vector<8xf32>
    %21 = vector.multi_reduction <add>, %20, %cst_7 [1] : vector<8x512xf32> to vector<8xf32>
    %22 = vector.shape_cast %21 : vector<8xf32> to vector<8x1xf32>
    %c0_8 = arith.constant 0 : index
    %c0_9 = arith.constant 0 : index
    %23 = vector.load %arg4[%c0_8, %c0_9] : memref<8x1xf32, #tpu.memory_space<vmem>>, vector<8x1xf32>
    tpu.vector_store %arg4[%c0_8, %c0_9], %22 {strides = array<i32>} : memref<8x1xf32, #tpu.memory_space<vmem>>, vector<8x1xf32>,
    return
  }
}

</mosaic_0001>

<bundles_post_ra>
// kernel: tpu_custom_call.1
= control target key start
LH: loop header
LB: loop body
LE: loop exit
PB: predicated region body
PF: predicated region fallthrough
CT: control target
= control target key end

     0   :  { %v184_v0 = vmov 0   ;;  %v185_v2 = vmov 1   ;;  %v27_v3 = vlaneseq  ;;  %vm174_vm0 = vcmask 7168   ;;  %s226_s0 = inlined_call_operand.vmem [shape: f32[8,2], index: 0, kind: input, shape index: {}]   ;;  %s227_s1 = inlined_call_operand.vmem [shape: f32[2,512], index: 1, kind: input, shape index: {}]   ;;  %s228_s2 = inlined_call_operand.vmem [shape: f32[1,512], index: 2, kind: input, shape index: {}]   ;;  %s229_s3 = inlined_call_operand.vmem [shape: f32[1,512], index: 3, kind: input, shape index: {}]   ;;  %s230_s4 = inlined_call_operand.vmem [shape: f32[8,1], index: 4, kind: output, shape index: {}]  }
   0x1   :  { %182 = vset.pattern.permute.xlu0 %v184_v0  ;;  %v17_v1 = vld [vmem:[%s226_s0] sm:$0xff] }
   0x2   :  { %23 = vperm.xlu0 %182, %v17_v1   ;;  %v28_v4 = vshrl.u32 %v27_v3, 7  ;;  %v18_v9 = vld [vmem:[%s227_s1] sm:$0xff] }
   0x3   :  { %v19_v27 = vld [vmem:[%s228_s2] sm:$0xf] }
   0x4   :  { %v29_v5 = vsub.s32 0, %v28_v4  ;;  %v33_v6 = vsub.s32 2, %v28_v4  ;;  %v37_v7 = vsub.s32 4, %v28_v4  ;;  %v41_v8 = vsub.s32 6, %v28_v4  ;;  %v20_v45 = vld [vmem:[%s229_s3] sm:$0xf] }
   0x5   :  { %v73_v10 = vsub.s32 1, %v28_v4  ;;  %v77_v11 = vsub.s32 3, %v28_v4  ;;  %v81_v12 = vsub.s32 5, %v28_v4  ;;  %v85_v13 = vsub.s32 7, %v28_v4 }
   0x6   :  { %183 = vset.pattern.permute.xlu0 %v185_v2  ;;  %v30_v14 = vrot.slane %v18_v9, %v29_v5  ;;  %v34_v15 = vrot.slane %v18_v9, %v33_v6  ;;  %v38_v16 = vrot.slane %v18_v9, %v37_v7  ;;  %v42_v17 = vrot.slane %v18_v9, %v41_v8 }
   0x7   :  { %68 = vperm.xlu0 %183, %v17_v1   ;;  %v74_v18 = vrot.slane %v18_v9, %v73_v10  ;;  %v78_v19 = vrot.slane %v18_v9, %v77_v11  ;;  %v82_v20 = vrot.slane %v18_v9, %v81_v12  ;;  %v86_v21 = vrot.slane %v18_v9, %v85_v13 }
   0x8   :  { %v50_v23 = vrot.slane %v30_v14, %v29_v5  ;;  %v54_v24 = vrot.slane %v34_v15, %v29_v5  ;;  %v58_v25 = vrot.slane %v38_v16, %v29_v5  ;;  %v62_v26 = vrot.slane %v42_v17, %v29_v5 }
   0x9   :  { %v94_v28 = vrot.slane %v74_v18, %v73_v10  ;;  %v98_v29 = vrot.slane %v78_v19, %v73_v10  ;;  %v102_v30 = vrot.slane %v82_v20, %v73_v10  ;;  %v106_v31 = vrot.slane %v86_v21, %v73_v10 }
   0xa   :  { %v119_v32 = vrot.slane %v19_v27, %v29_v5  ;;  %v123_v33 = vrot.slane %v19_v27, %v73_v10  ;;  %v127_v34 = vrot.slane %v19_v27, %v33_v6  ;;  %v131_v35 = vrot.slane %v19_v27, %v77_v11 }
   0xb   :  { %v148_v50 = vrot.slane %v20_v45, %v29_v5  ;;  %v152_v51 = vrot.slane %v20_v45, %v73_v10  ;;  %v156_v59 = vrot.slane %v20_v45, %v33_v6  ;;  %v160_v61 = vrot.slane %v20_v45, %v77_v11 }
  0x81   :  { %v24_v22 = vpop.permute.xlu0 %23 }
  0x82   :  { %v63_v36 = vmul.f32 %v50_v23, %v24_v22  ;;  %v64_v37 = vmul.f32 %v54_v24, %v24_v22  ;;  %v65_v38 = vmul.f32 %v58_v25, %v24_v22  ;;  %v66_v39 = vmul.f32 %v62_v26, %v24_v22 }
  0x86   :  { %v69_v40 = vpop.permute.xlu0 %68 }
  0x87   :  { %v107_v41 = vmul.f32 %v94_v28, %v69_v40  ;;  %v108_v42 = vmul.f32 %v98_v29, %v69_v40  ;;  %v109_v43 = vmul.f32 %v102_v30, %v69_v40  ;;  %v110_v44 = vmul.f32 %v106_v31, %v69_v40 }
  0x89   :  { %v111_v46 = vadd.f32 %v107_v41, %v63_v36  ;;  %v112_v47 = vadd.f32 %v108_v42, %v64_v37  ;;  %v113_v48 = vadd.f32 %v109_v43, %v65_v38  ;;  %v114_v49 = vadd.f32 %v110_v44, %v66_v39 }
  0x8b   :  { %v136_v52 = vadd.f32 %v119_v32, %v111_v46  ;;  %v137_v53 = vadd.f32 %v123_v33, %v112_v47  ;;  %v138_v54 = vadd.f32 %v127_v34, %v113_v48  ;;  %v139_v55 = vadd.f32 %v131_v35, %v114_v49 }
  0x8d   :  { %v140_v56 = vmax.f32 %v136_v52, 0.0  ;;  %v141_v57 = vmax.f32 %v137_v53, 0.0  ;;  %v142_v58 = vmax.f32 %v138_v54, 0.0  ;;  %v143_v60 = vmax.f32 %v139_v55, 0.0 }
  0x8f   :  { %v165_v62 = vmul.f32 %v148_v50, %v140_v56  ;;  %v166_v63 = vmul.f32 %v152_v51, %v141_v57  ;;  %v167_v0 = vmul.f32 %v156_v59, %v142_v58  ;;  %v168_v2 = vmul.f32 %v160_v61, %v143_v60 }
  0x91   :  { %v169_v1 = vadd.f32 %v166_v63, %v165_v62 }
  0x93   :  { %v170_v3 = vadd.f32 %v169_v1, %v167_v0 }
  0x95   :  { %v171_v4 = vadd.f32 %v170_v3, %v168_v2 }
  0x97   :  { %172 = vadd.xlane.f32.xlu1 %v171_v4 }
 0x124   :  { %v173_v5 = vpop.xlane.xlu1 %172 }
 0x125   :  { %175 = vst.msk [vmem:[%s230_s4] sm:$0xff] %vm174_vm0, %v173_v5 }

</bundles_post_ra>
